<compile_context>
chip_gen: v6e
topology: v6e:2x2x1
jax: 0.10.0
libtpu: 0.0.40
codegen_flags: <defaults>
</compile_context>

<pallas_src>
import functools
import math

import jax
import jax.numpy as jnp
from jax.experimental import pallas as pl
from jax.experimental.pallas import tpu as pltpu


LANE = 128      # lane width
SUBLANE = 8     # f32 sublane count


def _round_up(x, m):
    return ((x + m - 1) // m) * m


def _cdiv(a, b):
    return (a + b - 1) // b


def _device_kind():
    try:
        return jax.devices()[0].device_kind.lower()
    except Exception:
        return ""


# ------------------------- Pallas kernel -------------------------

def _policy_fwd_kernel(*refs, has_affine):
    if has_affine:
        (s_ref, w1_ref, b1_ref, w2_ref, b2_ref, w3_ref, b3_ref,
         scale_ref, bias_ref, out_ref) = refs
    else:
        (s_ref, w1_ref, b1_ref, w2_ref, b2_ref, w3_ref, b3_ref, out_ref) = refs

    # Hidden layer 1: (tb, num_inputs) @ (num_inputs, H_P) -> (tb, H_P), f32 accumulation.
    x = jnp.dot(s_ref[...].astype(w1_ref.dtype), w1_ref[...],
                preferred_element_type=jnp.float32)
    x = jnp.maximum(x + b1_ref[...], 0.0)

    # Hidden layer 2: (tb, H_P) @ (H_P, H_P) -> (tb, H_P)
    x = jnp.dot(x.astype(w2_ref.dtype), w2_ref[...],
                preferred_element_type=jnp.float32)
    x = jnp.maximum(x + b2_ref[...], 0.0)

    # Output head: (tb, H_P) @ (H_P, A_P) -> (tb, A_P)
    m = jnp.dot(x.astype(w3_ref.dtype), w3_ref[...],
                preferred_element_type=jnp.float32)
    m = jnp.tanh(m + b3_ref[...])

    if has_affine:
        # Per-action (or scalar, broadcast) action_scale / action_bias as lane-padded rows.
        m = m * scale_ref[...] + bias_ref[...]

    out_ref[...] = m.astype(out_ref.dtype)


# ------------------------- batch tiling -------------------------

def _choose_batch_tiling(batch, two_tc, batch_tile=None):
    if batch_tile is None:
        cap = 2048 if two_tc else 1024
        g = _cdiv(batch, cap)
        if two_tc:
            # aim for an even number of grid steps >= 4 so each of the 2 TCs gets
            # >= 2 pipelined steps (when the batch is big enough to split).
            g = max(g, min(4, _cdiv(batch, SUBLANE)))
            if g > 1 and g % 2:
                g += 1
        batch_tile = _round_up(_cdiv(batch, g), SUBLANE)
    else:
        batch_tile = _round_up(batch_tile, SUBLANE)
    grid_len = _cdiv(batch, batch_tile)
    if two_tc and grid_len > 1 and grid_len % 2:
        grid_len += 1
    return batch_tile, grid_len


# ------------------------- wrapper -------------------------

def deterministic_policy_forward(state, padded_params, *, num_actions=None,
                                 action_scale=1.0, action_bias=0.0,
                                 batch_tile=None, out_dtype=jnp.float32,
                                 return_padded=False):
    """Fused MLP forward pass on TPU via Pallas.

    state         : (B, num_inputs) f32 -- NOT lane-padded (full last dim is a legal block).
    padded_params : output of `prepare_params` (hidden/action dims lane-padded, weights (in, out)).
    num_actions   : original (unpadded) action dim; output is sliced to it unless return_padded.
    """
    w1, b1 = padded_params["w1"], padded_params["b1"]
    w2, b2 = padded_params["w2"], padded_params["b2"]
    w3, b3 = padded_params["w3"], padded_params["b3"]

    B, num_inputs = state.shape
    assert w1.shape[0] == num_inputs, "state feature dim must match w1 rows (state is unpadded)"
    H_P = w1.shape[1]
    A_P = w3.shape[1]
    if num_actions is None:
        num_actions = A_P

    kind = _device_kind()
    two_tc = "v7" in kind
    batch_tile, grid_len = _choose_batch_tiling(B, two_tc, batch_tile)
    B_pad = grid_len * batch_tile

    # Only batch rows are padded (cheap); the feature dim stays at its true width.
    if B_pad != B:
        state = jnp.pad(state, ((0, B_pad - B), (0, 0)))

    # Default (scale=1, bias=0): skip the affine ops; otherwise pass lane-padded (1, A_P) inputs
    # so runtime / per-action values never trigger a recompile.
    has_affine = not (isinstance(action_scale, (int, float))
                      and isinstance(action_bias, (int, float))
                      and float(action_scale) == 1.0 and float(action_bias) == 0.0)

    inputs = [state, w1, b1, w2, b2, w3, b3]
    if has_affine:
        def _vec(v):
            v = jnp.asarray(v, jnp.float32).reshape(-1)
            if v.shape[0] == 1:
                v = jnp.broadcast_to(v, (num_actions,))
            return jnp.pad(v, (0, A_P - v.shape[0])).reshape(1, A_P)
        inputs += [_vec(action_scale), _vec(action_bias)]

    kernel = functools.partial(_policy_fwd_kernel, has_affine=has_affine)

    # --- explicit VMEM budget with headroom (so realistic hidden sizes survive v7x / v5e limits)
    weight_bytes = sum(int(a.size) * a.dtype.itemsize for a in inputs[1:])
    tile_io_bytes = batch_tile * (num_inputs * 4 + A_P * jnp.dtype(out_dtype).itemsize)
    act_bytes = 3 * batch_tile * max(H_P, A_P) * 4
    footprint = 2 * weight_bytes + 2 * tile_io_bytes + act_bytes
    vmem_limit = int(min(64 << 20, max(32 << 20, 2 * footprint + (4 << 20))))

    def _run(weight_pipeline_mode):
        wkw = {} if weight_pipeline_mode is None else {"pipeline_mode": weight_pipeline_mode}
        in_specs = [
            # state: tiled along batch, full (unpadded) feature width.
            pl.BlockSpec((batch_tile, num_inputs), lambda i: (i, 0)),
        ]
        # weights / biases / affine rows: full arrays, constant block across grid steps
        # -> single-buffered (no benefit from double-buffering a never-changing block).
        for arr in inputs[1:]:
            in_specs.append(pl.BlockSpec(arr.shape, lambda i: (0, 0), **wkw))
        return pl.pallas_call(
            kernel,
            out_shape=jax.ShapeDtypeStruct((B_pad, A_P), out_dtype),
            grid_spec=pl.GridSpec(
                grid=(grid_len,),
                in_specs=in_specs,
                out_specs=pl.BlockSpec((batch_tile, A_P), lambda i: (i, 0)),
            ),
            compiler_params=pltpu.CompilerParams(
                dimension_semantics=("parallel",),
                vmem_limit_bytes=vmem_limit),
        )(*inputs)

    try:
        out_padded = _run(pl.Buffered(1))
    except Exception:
        # Fallback if single-buffering via pipeline_mode is not supported by this jax build.
        out_padded = _run(None)

    if return_padded:
        # Hand the lane-dense (B_pad, A_P) block straight to a fused consumer (no re-slice pass).
        return out_padded
    return out_padded[:B, :num_actions]


# ------------------------- param prep (pad once, not per call) -------------------------

def prepare_params(params, *, weight_dtype=jnp.bfloat16, mxu_multiple=None):
    """Zero-pad hidden/action dims to lane multiples and cast weights (default bf16 everywhere).

    * w1 keeps its true row count (num_inputs): the state is fed to the kernel unpadded.
    * Biases stay f32 so all element-wise math runs in f32 (required on v5e VPU/EUP).
    * On v6e/v7x, dims >= 256 round to 256 (full-width 2x256 MXU passes); smaller dims round
      to 128 (never pad 32 -> 256).
    * Zero padding is exact: padded hidden/action columns contribute 0 everywhere.
    """
    if mxu_multiple is None:
        kind = _device_kind()
        mxu_multiple = 256 if ("v6" in kind or "v7" in kind) else 128

    def _pad_dim(d):
        return _round_up(d, mxu_multiple if d >= mxu_multiple else LANE)

    num_inputs, hidden = params["w1"].shape
    num_actions = params["w3"].shape[1]
    H_P = _pad_dim(hidden)
    A_P = _pad_dim(num_actions)

    def pad2(a, rows, cols):
        return jnp.pad(a, ((0, rows - a.shape[0]), (0, cols - a.shape[1])))

    return {
        "w1": pad2(params["w1"], num_inputs, H_P).astype(weight_dtype),
        "b1": pad2(params["b1"], 1, H_P).astype(jnp.float32),
        "w2": pad2(params["w2"], H_P, H_P).astype(weight_dtype),
        "b2": pad2(params["b2"], 1, H_P).astype(jnp.float32),
        "w3": pad2(params["w3"], H_P, A_P).astype(weight_dtype),
        "b3": pad2(params["b3"], 1, A_P).astype(jnp.float32),
    }


# ------------------------- deterministic init (xavier_uniform, bias=0) -------------------------

def _xavier_uniform(key, fan_in, fan_out, gain=1.0):
    # torch.nn.init.xavier_uniform_: U(-a, a), a = gain * sqrt(6 / (fan_in + fan_out))
    a = gain * math.sqrt(6.0 / (fan_in + fan_out))
    # stored as (in_features, out_features) so the kernel does x @ W
    return jax.random.uniform(key, (fan_in, fan_out), jnp.float32, -a, a)


def init_params(key, num_inputs, num_actions, hidden_dim):
    k1, k2, k3 = jax.random.split(key, 3)
    return {
        "w1": _xavier_uniform(k1, num_inputs, hidden_dim),
        "b1": jnp.zeros((1, hidden_dim), jnp.float32),
        "w2": _xavier_uniform(k2, hidden_dim, hidden_dim),
        "b2": jnp.zeros((1, hidden_dim), jnp.float32),
        "w3": _xavier_uniform(k3, hidden_dim, num_actions),
        "b3": jnp.zeros((1, num_actions), jnp.float32),
    }


# ------------------------- pure-JAX reference -------------------------

def _reference_forward(state, params, action_scale=1.0, action_bias=0.0):
    x = jnp.maximum(state @ params["w1"] + params["b1"], 0.0)
    x = jnp.maximum(x @ params["w2"] + params["b2"], 0.0)
    return jnp.tanh(x @ params["w3"] + params["b3"]) * action_scale + action_bias


# TODO(synk): `sample()` uses an in-place torch RNG buffer (self.noise.normal_); not part of the
# forward hot path, so it is left out of the kernel (could be added with pltpu.prng_* if needed).


if __name__ == "__main__":
    # small shapes consistent with the module: state dim 16, hidden 32, 4 actions, batch 8
    num_inputs, num_actions, hidden_dim, batch = 16, 4, 32, 8

    key = jax.random.PRNGKey(0)
    pkey, skey = jax.random.split(key)
    params = init_params(pkey, num_inputs, num_actions, hidden_dim)
    state = jax.random.normal(skey, (batch, num_inputs), jnp.float32)
    ref = _reference_forward(state, params)

    # 1) f32-weight path: tight-tolerance correctness check vs the pure-JAX reference.
    p_f32 = prepare_params(params, weight_dtype=jnp.float32)
    out = deterministic_policy_forward(state, p_f32, num_actions=num_actions)
    out = jax.block_until_ready(out)
    assert out.shape == (batch, num_actions)
    assert jnp.allclose(out, ref, atol=1e-4, rtol=1e-4), "f32 path mismatch vs reference"

    # 2) recommended bf16-weight path (all generations) with bf16 output: loose tolerance.
    p_bf16 = prepare_params(params)  # weight_dtype defaults to bf16
    out_bf16 = deterministic_policy_forward(state, p_bf16, num_actions=num_actions,
                                            out_dtype=jnp.bfloat16)
    out_bf16 = jax.block_until_ready(out_bf16)
    assert out_bf16.dtype == jnp.bfloat16
    assert jnp.allclose(out_bf16.astype(jnp.float32), ref, atol=2e-2, rtol=2e-2), \
        "bf16 path mismatch vs reference"

    # 3) per-action action_scale / action_bias (real gym Box) path — runtime arrays, no recompile.
    a_scale = jnp.array([1.5, 2.0, 0.5, 1.0], jnp.float32)
    a_bias = jnp.array([0.1, -0.2, 0.0, 0.3], jnp.float32)
    out_aff = deterministic_policy_forward(state, p_f32, num_actions=num_actions,
                                           action_scale=a_scale, action_bias=a_bias)
    out_aff = jax.block_until_ready(out_aff)
    ref_aff = _reference_forward(state, params, a_scale, a_bias)
    assert jnp.allclose(out_aff, ref_aff, atol=1e-4, rtol=1e-4), "affine path mismatch"

    print("KERNEL_OK")
</pallas_src>

<mosaic_0001>
module attributes {stable_mosaic.version = 11 : i64} {
  func.func @_policy_fwd_kernel(%arg0: i32, %arg1: memref<8x16xf32, #tpu.memory_space<vmem>>, %arg2: memref<16x128xf32, #tpu.memory_space<vmem>>, %arg3: memref<1x128xf32, #tpu.memory_space<vmem>>, %arg4: memref<128x128xf32, #tpu.memory_space<vmem>>, %arg5: memref<1x128xf32, #tpu.memory_space<vmem>>, %arg6: memref<128x128xf32, #tpu.memory_space<vmem>>, %arg7: memref<1x128xf32, #tpu.memory_space<vmem>>, %arg8: memref<8x128xf32, #tpu.memory_space<vmem>>) attributes {dimension_semantics = [#tpu.dimension_semantics<parallel>], iteration_bounds = array<i64: 1>, scalar_prefetch = 0 : i64, scratch_operands = 0 : i64, tpu.core_type = #tpu.core_type<tc>, window_params = [{transform_indices = @transform_0, window_bounds = array<i64: 8, 16>}, {pipeline_mode = #tpu.pipeline_mode<synchronous>, transform_indices = @transform_1, window_bounds = array<i64: 16, 128>}, {pipeline_mode = #tpu.pipeline_mode<synchronous>, transform_indices = @transform_2, window_bounds = array<i64: 1, 128>}, {pipeline_mode = #tpu.pipeline_mode<synchronous>, transform_indices = @transform_3, window_bounds = array<i64: 128, 128>}, {pipeline_mode = #tpu.pipeline_mode<synchronous>, transform_indices = @transform_4, window_bounds = array<i64: 1, 128>}, {pipeline_mode = #tpu.pipeline_mode<synchronous>, transform_indices = @transform_5, window_bounds = array<i64: 128, 128>}, {pipeline_mode = #tpu.pipeline_mode<synchronous>, transform_indices = @transform_6, window_bounds = array<i64: 1, 128>}, {transform_indices = @transform_7, window_bounds = array<i64: 8, 128>}]} {
    %c0 = arith.constant 0 : index
    %c0_0 = arith.constant 0 : index
    %0 = vector.load %arg1[%c0, %c0_0] : memref<8x16xf32, #tpu.memory_space<vmem>>, vector<8x16xf32>
    %c0_1 = arith.constant 0 : index
    %c0_2 = arith.constant 0 : index
    %1 = vector.load %arg2[%c0_1, %c0_2] : memref<16x128xf32, #tpu.memory_space<vmem>>, vector<16x128xf32>
    %cst = arith.constant dense<0.000000e+00> : vector<8x128xf32>
    %2 = tpu.matmul %0, %1, %cst {dimension_numbers = #tpu.dot_dimension_numbers<[1], [0], [0], [1], [0, 0, 1, 1], [], []>} : vector<8x16xf32>, vector<16x128xf32>, vector<8x128xf32> -> vector<8x128xf32>
    %c0_3 = arith.constant 0 : index
    %c0_4 = arith.constant 0 : index
    %3 = vector.load %arg3[%c0_3, %c0_4] : memref<1x128xf32, #tpu.memory_space<vmem>>, vector<1x128xf32>
    %4 = vector.broadcast %3 : vector<1x128xf32> to vector<8x128xf32>
    %5 = arith.addf %2, %4 : vector<8x128xf32>
    %cst_5 = arith.constant 0.000000e+00 : f32
    %6 = vector.broadcast %cst_5 : f32 to vector<8x128xf32>
    %7 = arith.maximumf %5, %6 : vector<8x128xf32>
    %c0_6 = arith.constant 0 : index
    %c0_7 = arith.constant 0 : index
    %8 = vector.load %arg4[%c0_6, %c0_7] : memref<128x128xf32, #tpu.memory_space<vmem>>, vector<128x128xf32>
    %cst_8 = arith.constant dense<0.000000e+00> : vector<8x128xf32>
    %9 = tpu.matmul %7, %8, %cst_8 {dimension_numbers = #tpu.dot_dimension_numbers<[1], [0], [0], [1], [0, 0, 1, 1], [], []>} : vector<8x128xf32>, vector<128x128xf32>, vector<8x128xf32> -> vector<8x128xf32>
    %c0_9 = arith.constant 0 : index
    %c0_10 = arith.constant 0 : index
    %10 = vector.load %arg5[%c0_9, %c0_10] : memref<1x128xf32, #tpu.memory_space<vmem>>, vector<1x128xf32>
    %11 = vector.broadcast %10 : vector<1x128xf32> to vector<8x128xf32>
    %12 = arith.addf %9, %11 : vector<8x128xf32>
    %cst_11 = arith.constant 0.000000e+00 : f32
    %13 = vector.broadcast %cst_11 : f32 to vector<8x128xf32>
    %14 = arith.maximumf %12, %13 : vector<8x128xf32>
    %c0_12 = arith.constant 0 : index
    %c0_13 = arith.constant 0 : index
    %15 = vector.load %arg6[%c0_12, %c0_13] : memref<128x128xf32, #tpu.memory_space<vmem>>, vector<128x128xf32>
    %cst_14 = arith.constant dense<0.000000e+00> : vector<8x128xf32>
    %16 = tpu.matmul %14, %15, %cst_14 {dimension_numbers = #tpu.dot_dimension_numbers<[1], [0], [0], [1], [0, 0, 1, 1], [], []>} : vector<8x128xf32>, vector<128x128xf32>, vector<8x128xf32> -> vector<8x128xf32>
    %c0_15 = arith.constant 0 : index
    %c0_16 = arith.constant 0 : index
    %17 = vector.load %arg7[%c0_15, %c0_16] : memref<1x128xf32, #tpu.memory_space<vmem>>, vector<1x128xf32>
    %18 = vector.broadcast %17 : vector<1x128xf32> to vector<8x128xf32>
    %19 = arith.addf %16, %18 : vector<8x128xf32>
    %20 = math.tanh %19 : vector<8x128xf32>
    %c0_17 = arith.constant 0 : index
    %c0_18 = arith.constant 0 : index
    %21 = vector.load %arg8[%c0_17, %c0_18] : memref<8x128xf32, #tpu.memory_space<vmem>>, vector<8x128xf32>
    tpu.vector_store %arg8[%c0_17, %c0_18], %20 {strides = array<i32>} : memref<8x128xf32, #tpu.memory_space<vmem>>, vector<8x128xf32>,
    return
  }
  func.func @transform_0(%arg0: i32) -> (i32, i32) {
    %c0_i32 = arith.constant 0 : i32
    %c0_i32_0 = arith.constant 0 : i32
    return %arg0, %c0_i32 : i32, i32
  }
  func.func @transform_1(%arg0: i32) -> (i32, i32) {
    %c0_i32 = arith.constant 0 : i32
    %c0_i32_0 = arith.constant 0 : i32
    %c0_i32_1 = arith.constant 0 : i32
    return %c0_i32, %c0_i32_0 : i32, i32
  }
  func.func @transform_2(%arg0: i32) -> (i32, i32) {
    %c0_i32 = arith.constant 0 : i32
    %c0_i32_0 = arith.constant 0 : i32
    %c0_i32_1 = arith.constant 0 : i32
    return %c0_i32, %c0_i32_0 : i32, i32
  }
  func.func @transform_3(%arg0: i32) -> (i32, i32) {
    %c0_i32 = arith.constant 0 : i32
    %c0_i32_0 = arith.constant 0 : i32
    %c0_i32_1 = arith.constant 0 : i32
    return %c0_i32, %c0_i32_0 : i32, i32
  }
  func.func @transform_4(%arg0: i32) -> (i32, i32) {
    %c0_i32 = arith.constant 0 : i32
    %c0_i32_0 = arith.constant 0 : i32
    %c0_i32_1 = arith.constant 0 : i32
    return %c0_i32, %c0_i32_0 : i32, i32
  }
  func.func @transform_5(%arg0: i32) -> (i32, i32) {
    %c0_i32 = arith.constant 0 : i32
    %c0_i32_0 = arith.constant 0 : i32
    %c0_i32_1 = arith.constant 0 : i32
    return %c0_i32, %c0_i32_0 : i32, i32
  }
  func.func @transform_6(%arg0: i32) -> (i32, i32) {
    %c0_i32 = arith.constant 0 : i32
    %c0_i32_0 = arith.constant 0 : i32
    %c0_i32_1 = arith.constant 0 : i32
    return %c0_i32, %c0_i32_0 : i32, i32
  }
  func.func @transform_7(%arg0: i32) -> (i32, i32) {
    %c0_i32 = arith.constant 0 : i32
    %c0_i32_0 = arith.constant 0 : i32
    return %arg0, %c0_i32 : i32, i32
  }
}

module attributes {stable_mosaic.version = 11 : i64} {
  func.func @_policy_fwd_kernel(%arg0: i32, %arg1: memref<8x16xf32, #tpu.memory_space<vmem>>, %arg2: memref<16x128xf32, #tpu.memory_space<vmem>>, %arg3: memref<1x128xf32, #tpu.memory_space<vmem>>, %arg4: memref<128x128xf32, #tpu.memory_space<vmem>>, %arg5: memref<1x128xf32, #tpu.memory_space<vmem>>, %arg6: memref<128x128xf32, #tpu.memory_space<vmem>>, %arg7: memref<1x128xf32, #tpu.memory_space<vmem>>, %arg8: memref<8x128xf32, #tpu.memory_space<vmem>>) attributes {dimension_semantics = [#tpu.dimension_semantics<parallel>], iteration_bounds = array<i64: 1>, scalar_prefetch = 0 : i64, scratch_operands = 0 : i64, tpu.core_type = #tpu.core_type<tc>, window_params = [{transform_indices = @transform_0, window_bounds = array<i64: 8, 16>}, {pipeline_mode = #tpu.pipeline_mode<synchronous>, transform_indices = @transform_1, window_bounds = array<i64: 16, 128>}, {pipeline_mode = #tpu.pipeline_mode<synchronous>, transform_indices = @transform_2, window_bounds = array<i64: 1, 128>}, {pipeline_mode = #tpu.pipeline_mode<synchronous>, transform_indices = @transform_3, window_bounds = array<i64: 128, 128>}, {pipeline_mode = #tpu.pipeline_mode<synchronous>, transform_indices = @transform_4, window_bounds = array<i64: 1, 128>}, {pipeline_mode = #tpu.pipeline_mode<synchronous>, transform_indices = @transform_5, window_bounds = array<i64: 128, 128>}, {pipeline_mode = #tpu.pipeline_mode<synchronous>, transform_indices = @transform_6, window_bounds = array<i64: 1, 128>}, {transform_indices = @transform_7, window_bounds = array<i64: 8, 128>}]} {
    %c0 = arith.constant 0 : index
    %c0_0 = arith.constant 0 : index
    %0 = vector.load %arg1[%c0, %c0_0] : memref<8x16xf32, #tpu.memory_space<vmem>>, vector<8x16xf32>
    %c0_1 = arith.constant 0 : index
    %c0_2 = arith.constant 0 : index
    %1 = vector.load %arg2[%c0_1, %c0_2] : memref<16x128xf32, #tpu.memory_space<vmem>>, vector<16x128xf32>
    %cst = arith.constant dense<0.000000e+00> : vector<8x128xf32>
    %2 = tpu.matmul %0, %1, %cst {dimension_numbers = #tpu.dot_dimension_numbers<[1], [0], [0], [1], [0, 0, 1, 1], [], []>} : vector<8x16xf32>, vector<16x128xf32>, vector<8x128xf32> -> vector<8x128xf32>
    %c0_3 = arith.constant 0 : index
    %c0_4 = arith.constant 0 : index
    %3 = vector.load %arg3[%c0_3, %c0_4] : memref<1x128xf32, #tpu.memory_space<vmem>>, vector<1x128xf32>
    %4 = vector.broadcast %3 : vector<1x128xf32> to vector<8x128xf32>
    %5 = arith.addf %2, %4 : vector<8x128xf32>
    %cst_5 = arith.constant 0.000000e+00 : f32
    %6 = vector.broadcast %cst_5 : f32 to vector<8x128xf32>
    %7 = arith.maximumf %5, %6 : vector<8x128xf32>
    %c0_6 = arith.constant 0 : index
    %c0_7 = arith.constant 0 : index
    %8 = vector.load %arg4[%c0_6, %c0_7] : memref<128x128xf32, #tpu.memory_space<vmem>>, vector<128x128xf32>
    %cst_8 = arith.constant dense<0.000000e+00> : vector<8x128xf32>
    %9 = tpu.matmul %7, %8, %cst_8 {dimension_numbers = #tpu.dot_dimension_numbers<[1], [0], [0], [1], [0, 0, 1, 1], [], []>} : vector<8x128xf32>, vector<128x128xf32>, vector<8x128xf32> -> vector<8x128xf32>
    %c0_9 = arith.constant 0 : index
    %c0_10 = arith.constant 0 : index
    %10 = vector.load %arg5[%c0_9, %c0_10] : memref<1x128xf32, #tpu.memory_space<vmem>>, vector<1x128xf32>
    %11 = vector.broadcast %10 : vector<1x128xf32> to vector<8x128xf32>
    %12 = arith.addf %9, %11 : vector<8x128xf32>
    %cst_11 = arith.constant 0.000000e+00 : f32
    %13 = vector.broadcast %cst_11 : f32 to vector<8x128xf32>
    %14 = arith.maximumf %12, %13 : vector<8x128xf32>
    %c0_12 = arith.constant 0 : index
    %c0_13 = arith.constant 0 : index
    %15 = vector.load %arg6[%c0_12, %c0_13] : memref<128x128xf32, #tpu.memory_space<vmem>>, vector<128x128xf32>
    %cst_14 = arith.constant dense<0.000000e+00> : vector<8x128xf32>
    %16 = tpu.matmul %14, %15, %cst_14 {dimension_numbers = #tpu.dot_dimension_numbers<[1], [0], [0], [1], [0, 0, 1, 1], [], []>} : vector<8x128xf32>, vector<128x128xf32>, vector<8x128xf32> -> vector<8x128xf32>
    %c0_15 = arith.constant 0 : index
    %c0_16 = arith.constant 0 : index
    %17 = vector.load %arg7[%c0_15, %c0_16] : memref<1x128xf32, #tpu.memory_space<vmem>>, vector<1x128xf32>
    %18 = vector.broadcast %17 : vector<1x128xf32> to vector<8x128xf32>
    %19 = arith.addf %16, %18 : vector<8x128xf32>
    %20 = math.tanh %19 : vector<8x128xf32>
    %c0_17 = arith.constant 0 : index
    %c0_18 = arith.constant 0 : index
    %21 = vector.load %arg8[%c0_17, %c0_18] : memref<8x128xf32, #tpu.memory_space<vmem>>, vector<8x128xf32>
    tpu.vector_store %arg8[%c0_17, %c0_18], %20 {strides = array<i32>} : memref<8x128xf32, #tpu.memory_space<vmem>>, vector<8x128xf32>,
    return
  }
  func.func @transform_0(%arg0: i32) -> (i32, i32) {
    %c0_i32 = arith.constant 0 : i32
    %c0_i32_0 = arith.constant 0 : i32
    return %arg0, %c0_i32 : i32, i32
  }
  func.func @transform_1(%arg0: i32) -> (i32, i32) {
    %c0_i32 = arith.constant 0 : i32
    %c0_i32_0 = arith.constant 0 : i32
    %c0_i32_1 = arith.constant 0 : i32
    return %c0_i32, %c0_i32_0 : i32, i32
  }
  func.func @transform_2(%arg0: i32) -> (i32, i32) {
    %c0_i32 = arith.constant 0 : i32
    %c0_i32_0 = arith.constant 0 : i32
    %c0_i32_1 = arith.constant 0 : i32
    return %c0_i32, %c0_i32_0 : i32, i32
  }
  func.func @transform_3(%arg0: i32) -> (i32, i32) {
    %c0_i32 = arith.constant 0 : i32
    %c0_i32_0 = arith.constant 0 : i32
    %c0_i32_1 = arith.constant 0 : i32
    return %c0_i32, %c0_i32_0 : i32, i32
  }
  func.func @transform_4(%arg0: i32) -> (i32, i32) {
    %c0_i32 = arith.constant 0 : i32
    %c0_i32_0 = arith.constant 0 : i32
    %c0_i32_1 = arith.constant 0 : i32
    return %c0_i32, %c0_i32_0 : i32, i32
  }
  func.func @transform_5(%arg0: i32) -> (i32, i32) {
    %c0_i32 = arith.constant 0 : i32
    %c0_i32_0 = arith.constant 0 : i32
    %c0_i32_1 = arith.constant 0 : i32
    return %c0_i32, %c0_i32_0 : i32, i32
  }
  func.func @transform_6(%arg0: i32) -> (i32, i32) {
    %c0_i32 = arith.constant 0 : i32
    %c0_i32_0 = arith.constant 0 : i32
    %c0_i32_1 = arith.constant 0 : i32
    return %c0_i32, %c0_i32_0 : i32, i32
  }
  func.func @transform_7(%arg0: i32) -> (i32, i32) {
    %c0_i32 = arith.constant 0 : i32
    %c0_i32_0 = arith.constant 0 : i32
    return %arg0, %c0_i32 : i32, i32
  }
}

</mosaic_0001>

<bundles_post_ra>
// kernel: tpu_custom_call.1
= control target key start
LH: loop header
LB: loop body
LE: loop exit
PB: predicated region body
PF: predicated region fallthrough
CT: control target
= control target key end

     0   :  { %12 = vsyncpa [#allocation3], 0  ;;  %s730_s0 = inlined_call_operand.hbm [shape: f32[8,16], index: 0, kind: input, shape index: {}]   ;;  %s731_s1 = inlined_call_operand.hbm [shape: f32[16,128], index: 1, kind: input, shape index: {}]   ;;  %s732_s2 = inlined_call_operand.vmem [shape: f32[1,128], index: 2, kind: input, shape index: {}]   ;;  %s733_s3 = inlined_call_operand.hbm [shape: f32[128,128], index: 3, kind: input, shape index: {}]   ;;  %s734_s4 = inlined_call_operand.vmem [shape: f32[1,128], index: 4, kind: input, shape index: {}]   ;;  %s735_s5 = inlined_call_operand.hbm [shape: f32[128,128], index: 5, kind: input, shape index: {}]   ;;  %s736_s6 = inlined_call_operand.vmem [shape: f32[1,128], index: 6, kind: input, shape index: {}]   ;;  %s737_s7 = inlined_call_operand.hbm [shape: f32[8,128], index: 7, kind: output, shape index: {}]  }
   0x1   :  { %13 = vsyncpa [#allocation6], 0 }
   0x2   :  { %14 = vsyncpa [#allocation9], 0 }
   0x3   :  { %15 = vsyncpa [#allocation4], 0  ;;  %s608_s24 = smov [#allocation5]  }
   0x4   :  { %s31_s25 = sshll.u32 %s608_s24, 4  ;;  %s32_s25 = int_to_ptr.vmem [resolvable:$true] %s31_s25 }
   0x5   :  { %s508_s26 = scalar_lea.vmem %s32_s25, 256  ;;  %p513_p1 = scmp.lt.s32.totalorder %s32_s25, %s32_s25 }
   0x6   :  { %p509_p0 = scmp.ne.s32.totalorder %s32_s25, %s508_s26  ;;  %p514_p2 = scmp.lt.s32.totalorder %s508_s26, %s508_s26 }
   0x8   :  { %p515_p3 = por %p514_p2, %p513_p1 }
   0xa   :  { %p516_p4 = pnand %p515_p3, %p509_p0 }
   0xc   :  { %519 = shalt.err (!%p516_p4)
}
   0xd   :  { %s609_s27 = smov 128   ;;  %s610_s28 = smov 8  }
   0xe   :  { %37 = dma.hbm_to_vmem [thread:$0]  %s731_s1, 256, %s32_s25, [#allocation6], %s609_s27, %s609_s27, %s610_s28  }
   0xf   :  { %s611_s8 = smov [#allocation2]   ;;  %s612_s10 = smov [#allocation7]  }
  0x10   :  { %s22_s9 = sshll.u32 %s611_s8, 4  ;;  %s45_s11 = sshll.u32 %s612_s10, 4  ;;  %s23_s9 = int_to_ptr.vmem [resolvable:$true] %s22_s9  ;;  %s46_s11 = int_to_ptr.vmem [resolvable:$true] %s45_s11 }
  0x11   :  { %s528_s12 = scalar_lea.vmem %s23_s9, 128  ;;  %p533_p6 = scmp.lt.s32.totalorder %s23_s9, %s23_s9 }
  0x12   :  { %p529_p5 = scmp.ne.s32.totalorder %s23_s9, %s528_s12  ;;  %p534_p7 = scmp.lt.s32.totalorder %s528_s12, %s528_s12 }
  0x14   :  { %p535_p8 = por %p534_p7, %p533_p6 }
  0x16   :  { %p536_p9 = pnand %p535_p8, %p529_p5 }
  0x18   :  { %539 = shalt.err (!%p536_p9)
}
  0x19   :  { %25 = dma.hbm_to_vmem [thread:$0]  %s730_s0, 128, %s23_s9, [#allocation3]  }
  0x1a   :  { %s548_s15 = scalar_lea.vmem %s46_s11, 2048  ;;  %p553_p11 = scmp.lt.s32.totalorder %s46_s11, %s46_s11 }
  0x1b   :  { %p549_p10 = scmp.ne.s32.totalorder %s46_s11, %s548_s15  ;;  %p554_p12 = scmp.lt.s32.totalorder %s548_s15, %s548_s15 }
  0x1d   :  { %p555_p13 = por %p554_p12, %p553_p11 }
  0x1f   :  { %p556_p0 = pnand %p555_p13, %p549_p10 }
  0x21   :  { %559 = shalt.err (!%p556_p0)
}
  0x22   :  { %51 = dma.hbm_to_vmem [thread:$0]  %s733_s3, 2048, %s46_s11, [#allocation6], %s609_s27, %s609_s27, %s610_s28  }
  0x23   :  { %s613_s17 = smov [#allocation8]  }
  0x24   :  { %s59_s18 = sshll.u32 %s613_s17, 4  ;;  %s60_s18 = int_to_ptr.vmem [resolvable:$true] %s59_s18 }
  0x25   :  { %s568_s19 = scalar_lea.vmem %s60_s18, 2048  ;;  %p573_p2 = scmp.lt.s32.totalorder %s60_s18, %s60_s18 }
  0x26   :  { %p569_p1 = scmp.ne.s32.totalorder %s60_s18, %s568_s19  ;;  %p574_p3 = scmp.lt.s32.totalorder %s568_s19, %s568_s19 }
  0x28   :  { %p575_p4 = por %p574_p3, %p573_p2 }
  0x2a   :  { %p576_p5 = pnand %p575_p4, %p569_p1 }
  0x2c   :  { %579 = shalt.err (!%p576_p5)
}
  0x2d   :  { %65 = dma.hbm_to_vmem [thread:$0]  %s735_s5, 2048, %s60_s18, [#allocation9], %s609_s27, %s609_s27, %s610_s28  }
  0x2e   :  { %600 = dma.done.wait [#allocation3], 128  }
  0x2f   :  { %601 = vsyncadd [#allocation3], 4294967168 }
  0x30   :  { %602 = dma.done.wait [#allocation6], 2304  }
  0x31   :  { %603 = vsyncadd [#allocation6], 4294964992 }
  0x32   :  { %604 = dma.done.wait [#allocation9], 2048  }
  0x33   :  { %605 = vsyncadd [#allocation9], 4294965248  ;;  %v614_v0 = vmov 0.0   ;;  %vm615_vm0 = vmmov 0   ;;  %v82_v1 = vld [vmem:[#allocation5 + $0x8] sm:$0xff]  ;;  %v81_v2 = vld [vmem:[#allocation5] sm:$0xff] }
  0x34   :  { %412 = vmatprep.subr.mxu0 %v614_v0  ;;  %416 = vmatprep.mubr.msk.f32.mxu0 %vm615_vm0, %v614_v0  ;;  %v80_v3 = vld [vmem:[#allocation2] sm:$0xff]  ;;  %vm90_vm1 = vcmask 130048   ;;  %v180_v4 = vld [vmem:[#allocation7 + $0x78] sm:$0xff]  ;;  %v179_v5 = vld [vmem:[#allocation7 + $0x70] sm:$0xff]  ;;  %s616_s24 = smov [#allocation10]  }
  0x35   :  { %419 = vmatprep.subr.mxu1 %v614_v0  ;;  %451 = vmatprep.mubr.msk.f32.mxu1 %vm615_vm0, %v614_v0  ;;  %v178_v6 = vld [vmem:[#allocation7 + $0x68] sm:$0xff]  ;;  %v177_v7 = vld [vmem:[#allocation7 + $0x60] sm:$0xff]  ;;  %v176_v8 = vld [vmem:[#allocation7 + $0x58] sm:$0xff]  ;;  %s360_s25 = sshll.u32 %s616_s24, 4  ;;  %s361_s25 = int_to_ptr.vmem [resolvable:$true] %s360_s25 }
  0x36   :  { %413 = vmatpush3.msra.mxu0 %v82_v1  ;;  %420 = vmatpush3.msra.mxu1 %v180_v4  ;;  %v175_v9 = vld [vmem:[#allocation7 + $0x50] sm:$0xff]  ;;  %v174_v10 = vld [vmem:[#allocation7 + $0x48] sm:$0xff]  ;;  %v173_v11 = vld [vmem:[#allocation7 + $0x40] sm:$0xff]  ;;  %s580_s26 = scalar_lea.vmem %s361_s25, 128  ;;  %p585_p7 = scmp.lt.s32.totalorder %s361_s25, %s361_s25 }
  0x37   :  { %414 = vmatprep.subr.mxu0 %v614_v0  ;;  %421 = vmatprep.subr.mxu1 %v614_v0  ;;  %v172_v12 = vld [vmem:[#allocation7 + $0x38] sm:$0xff]  ;;  %v171_v13 = vld [vmem:[#allocation7 + $0x30] sm:$0xff]  ;;  %v170_v14 = vld [vmem:[#allocation7 + $0x28] sm:$0xff]  ;;  %p581_p6 = scmp.ne.s32.totalorder %s361_s25, %s580_s26  ;;  %p586_p8 = scmp.lt.s32.totalorder %s580_s26, %s580_s26 }
  0x38   :  { %415 = vmatpush3.msra.mxu0 %v81_v2  ;;  %422 = vmatpush3.msra.mxu1 %v179_v5  ;;  %v169_v15 = vld [vmem:[#allocation7 + $0x20] sm:$0xff]  ;;  %v168_v16 = vld [vmem:[#allocation7 + $0x18] sm:$0xff]  ;;  %v167_v17 = vld [vmem:[#allocation7 + $0x10] sm:$0xff] }
  0x39   :  { %417 = vmatmul.mubr.msk.f32.vlgmr.msra.gmra.mxu0 %vm90_vm1, %v80_v3  ;;  %423 = vmatprep.subr.mxu1 %v614_v0  ;;  %v166_v18 = vld [vmem:[#allocation7 + $0x8] sm:$0xff]  ;;  %v165_v19 = vld [vmem:[#allocation7] sm:$0xff]  ;;  %v274_v20 = vld [vmem:[#allocation8 + $0x78] sm:$0xff]  ;;  %p587_p9 = por %p586_p8, %p585_p7 }
  0x3a   :  { %454 = vmatprep.subr.mxu0 %v614_v0  ;;  %424 = vmatpush3.msra.mxu1 %v178_v6  ;;  %v273_v21 = vld [vmem:[#allocation8 + $0x70] sm:$0xff]  ;;  %v272_v22 = vld [vmem:[#allocation8 + $0x68] sm:$0xff]  ;;  %v271_v23 = vld [vmem:[#allocation8 + $0x60] sm:$0xff] }
  0x3b   :  { %486 = vmatprep.mubr.msk.f32.mxu0 %vm615_vm0, %v614_v0  ;;  %425 = vmatprep.subr.mxu1 %v614_v0  ;;  %v270_v24 = vld [vmem:[#allocation8 + $0x58] sm:$0xff]  ;;  %v269_v25 = vld [vmem:[#allocation8 + $0x50] sm:$0xff]  ;;  %v268_v26 = vld [vmem:[#allocation8 + $0x48] sm:$0xff]  ;;  %p588_p10 = pnand %p587_p9, %p581_p6 }
  0x3c   :  { %426 = vmatpush3.msra.mxu1 %v177_v7  ;;  %455 = vmatpush3.msra.mxu0 %v274_v20  ;;  %v267_v27 = vld [vmem:[#allocation8 + $0x40] sm:$0xff]  ;;  %v266_v28 = vld [vmem:[#allocation8 + $0x38] sm:$0xff]  ;;  %v265_v29 = vld [vmem:[#allocation8 + $0x30] sm:$0xff] }
  0x3d   :  { %427 = vmatprep.subr.mxu1 %v614_v0  ;;  %456 = vmatprep.subr.mxu0 %v614_v0  ;;  %v264_v30 = vld [vmem:[#allocation8 + $0x28] sm:$0xff]  ;;  %v263_v31 = vld [vmem:[#allocation8 + $0x20] sm:$0xff]  ;;  %v262_v32 = vld [vmem:[#allocation8 + $0x18] sm:$0xff] }
  0x3e   :  { %428 = vmatpush3.msra.mxu1 %v176_v8  ;;  %457 = vmatpush3.msra.mxu0 %v273_v21  ;;  %v371_v33 = vld [vmem:[%s732_s2] ss:$0 sm:$0xff]  ;;  %v261_v38 = vld [vmem:[#allocation8 + $0x10] sm:$0xff]  ;;  %v259_v40 = vld [vmem:[#allocation8] sm:$0xff] }
  0x3f   :  { %429 = vmatprep.subr.mxu1 %v614_v0  ;;  %458 = vmatprep.subr.mxu0 %v614_v0  ;;  %v260_v39 = vld [vmem:[#allocation8 + $0x8] sm:$0xff] }
  0x40   :  { %430 = vmatpush3.msra.mxu1 %v175_v9  ;;  %459 = vmatpush3.msra.mxu0 %v272_v22  ;;  %v373_v41 = vld [vmem:[%s734_s4] ss:$0 sm:$0xff] }
  0x41   :  { %431 = vmatprep.subr.mxu1 %v614_v0  ;;  %460 = vmatprep.subr.mxu0 %v614_v0  ;;  %v374_v46 = vld [vmem:[%s736_s6] ss:$0 sm:$0xff] }
  0x42   :  { %432 = vmatpush3.msra.mxu1 %v174_v10  ;;  %461 = vmatpush3.msra.mxu0 %v271_v23 }
  0x43   :  { %433 = vmatprep.subr.mxu1 %v614_v0  ;;  %462 = vmatprep.subr.mxu0 %v614_v0 }
  0x44   :  { %434 = vmatpush3.msra.mxu1 %v173_v11  ;;  %463 = vmatpush3.msra.mxu0 %v270_v24 }
  0x45   :  { %435 = vmatprep.subr.mxu1 %v614_v0  ;;  %464 = vmatprep.subr.mxu0 %v614_v0 }
  0x46   :  { %436 = vmatpush3.msra.mxu1 %v172_v12  ;;  %465 = vmatpush3.msra.mxu0 %v269_v25 }
  0x47   :  { %437 = vmatprep.subr.mxu1 %v614_v0  ;;  %466 = vmatprep.subr.mxu0 %v614_v0 }
  0x48   :  { %438 = vmatpush3.msra.mxu1 %v171_v13  ;;  %467 = vmatpush3.msra.mxu0 %v268_v26 }
  0x49   :  { %439 = vmatprep.subr.mxu1 %v614_v0  ;;  %468 = vmatprep.subr.mxu0 %v614_v0 }
  0x4a   :  { %440 = vmatpush3.msra.mxu1 %v170_v14  ;;  %469 = vmatpush3.msra.mxu0 %v267_v27 }
  0x4b   :  { %441 = vmatprep.subr.mxu1 %v614_v0  ;;  %470 = vmatprep.subr.mxu0 %v614_v0 }
  0x4c   :  { %442 = vmatpush3.msra.mxu1 %v169_v15  ;;  %471 = vmatpush3.msra.mxu0 %v266_v28 }
  0x4d   :  { %443 = vmatprep.subr.mxu1 %v614_v0  ;;  %472 = vmatprep.subr.mxu0 %v614_v0 }
  0x4e   :  { %444 = vmatpush3.msra.mxu1 %v168_v16  ;;  %473 = vmatpush3.msra.mxu0 %v265_v29 }
  0x4f   :  { %445 = vmatprep.subr.mxu1 %v614_v0  ;;  %474 = vmatprep.subr.mxu0 %v614_v0 }
  0x50   :  { %446 = vmatpush3.msra.mxu1 %v167_v17  ;;  %475 = vmatpush3.msra.mxu0 %v264_v30 }
  0x51   :  { %447 = vmatprep.subr.mxu1 %v614_v0  ;;  %476 = vmatprep.subr.mxu0 %v614_v0 }
  0x52   :  { %448 = vmatpush3.msra.mxu1 %v166_v18  ;;  %477 = vmatpush3.msra.mxu0 %v263_v31 }
  0x53   :  { %449 = vmatprep.subr.mxu1 %v614_v0  ;;  %478 = vmatprep.subr.mxu0 %v614_v0 }
  0x54   :  { %450 = vmatpush3.msra.mxu1 %v165_v19  ;;  %479 = vmatpush3.msra.mxu0 %v262_v32 }
  0x55   :  { %480 = vmatprep.subr.mxu0 %v614_v0 }
  0x56   :  { %481 = vmatpush3.msra.mxu0 %v261_v38 }
  0x57   :  { %482 = vmatprep.subr.mxu0 %v614_v0 }
  0x58   :  { %483 = vmatpush3.msra.mxu0 %v260_v39 }
  0x59   :  { %484 = vmatprep.subr.mxu0 %v614_v0 }
  0x5a   :  { %485 = vmatpush3.msra.mxu0 %v259_v40 }
  0xf9   :  { %v160_v34 = vpop.f32.mrf.mxu0 }
  0xfa   :  { %v161_v35 = vadd.f32 %v371_v33, %v160_v34 }
  0xfb   :  { %v418_v36 = vpop.f32.mrf.mxu0 }
  0xfc   :  { %v164_v37 = vmax.f32 %v161_v35, 0.0 }
  0xfe   :  { %452 = vmatmul.mubr.f32.vlgmr.msra.gmra.mxu1 %v164_v37 }
 0x1be   :  { %v254_v42 = vpop.f32.mrf.mxu1 }
 0x1bf   :  { %v255_v43 = vadd.f32 %v373_v41, %v254_v42 }
 0x1c0   :  { %v453_v44 = vpop.f32.mrf.mxu1 }
 0x1c1   :  { %v258_v45 = vmax.f32 %v255_v43, 0.0 }
 0x1c3   :  { %487 = vmatmul.mubr.f32.vlgmr.msra.gmra.mxu0 %v258_v45 }
 0x283   :  { %v348_v47 = vpop.f32.mrf.mxu0 }
 0x284   :  { %v349_v48 = vadd.f32 %v374_v46, %v348_v47 }
 0x285   :  { %v488_v49 = vpop.f32.mrf.mxu0 }
 0x286   :  { %498 = vtanh.f32 %v349_v48 }
 0x293   :  { %v499_v50 = vpop.eup %498 }
 0x294   :  { %353 = vst [vmem:[#allocation10] sm:$0xff] %v499_v50 }
 0x295   :  { %591 = shalt.err (!%p588_p10)
}
 0x296   :  { %363 = dma.vmem_to_hbm [thread:$0]  %s361_s25, 128, %s737_s7, [#allocation4]  }
 0x297   :  { %606 = dma.done.wait [#allocation4], 128  }
 0x298   :  { %607 = vsyncadd [#allocation4], 4294967168 }
 0x299   :  { %367 = vsyncpa [#allocation3], 1 }
 0x29a   :  { %368 = vsyncpa [#allocation6], 1 }
 0x29b   :  { %369 = vsyncpa [#allocation9], 1 }
 0x29c   :  { %370 = vsyncpa [#allocation4], 1 }

// kernel: tpu_custom_call.1
= control target key start
LH: loop header
LB: loop body
LE: loop exit
PB: predicated region body
PF: predicated region fallthrough
CT: control target
= control target key end

     0   :  { %12 = vsyncpa [#allocation3], 0  ;;  %s730_s0 = inlined_call_operand.hbm [shape: f32[8,16], index: 0, kind: input, shape index: {}]   ;;  %s731_s1 = inlined_call_operand.hbm [shape: f32[16,128], index: 1, kind: input, shape index: {}]   ;;  %s732_s2 = inlined_call_operand.vmem [shape: f32[1,128], index: 2, kind: input, shape index: {}]   ;;  %s733_s3 = inlined_call_operand.hbm [shape: f32[128,128], index: 3, kind: input, shape index: {}]   ;;  %s734_s4 = inlined_call_operand.vmem [shape: f32[1,128], index: 4, kind: input, shape index: {}]   ;;  %s735_s5 = inlined_call_operand.hbm [shape: f32[128,128], index: 5, kind: input, shape index: {}]   ;;  %s736_s6 = inlined_call_operand.vmem [shape: f32[1,128], index: 6, kind: input, shape index: {}]   ;;  %s737_s7 = inlined_call_operand.hbm [shape: f32[8,128], index: 7, kind: output, shape index: {}]  }
   0x1   :  { %13 = vsyncpa [#allocation6], 0 }
   0x2   :  { %14 = vsyncpa [#allocation9], 0 }
   0x3   :  { %15 = vsyncpa [#allocation4], 0  ;;  %s608_s24 = smov [#allocation5]  }
   0x4   :  { %s31_s25 = sshll.u32 %s608_s24, 4  ;;  %s32_s25 = int_to_ptr.vmem [resolvable:$true] %s31_s25 }
   0x5   :  { %s508_s26 = scalar_lea.vmem %s32_s25, 256  ;;  %p513_p1 = scmp.lt.s32.totalorder %s32_s25, %s32_s25 }
   0x6   :  { %p509_p0 = scmp.ne.s32.totalorder %s32_s25, %s508_s26  ;;  %p514_p2 = scmp.lt.s32.totalorder %s508_s26, %s508_s26 }
   0x8   :  { %p515_p3 = por %p514_p2, %p513_p1 }
   0xa   :  { %p516_p4 = pnand %p515_p3, %p509_p0 }
   0xc   :  { %519 = shalt.err (!%p516_p4)
}
   0xd   :  { %s609_s27 = smov 128   ;;  %s610_s28 = smov 8  }
   0xe   :  { %37 = dma.hbm_to_vmem [thread:$0]  %s731_s1, 256, %s32_s25, [#allocation6], %s609_s27, %s609_s27, %s610_s28  }
   0xf   :  { %s611_s8 = smov [#allocation2]   ;;  %s612_s10 = smov [#allocation7]  }
  0x10   :  { %s22_s9 = sshll.u32 %s611_s8, 4  ;;  %s45_s11 = sshll.u32 %s612_s10, 4  ;;  %s23_s9 = int_to_ptr.vmem [resolvable:$true] %s22_s9  ;;  %s46_s11 = int_to_ptr.vmem [resolvable:$true] %s45_s11 }
  0x11   :  { %s528_s12 = scalar_lea.vmem %s23_s9, 128  ;;  %p533_p6 = scmp.lt.s32.totalorder %s23_s9, %s23_s9 }
  0x12   :  { %p529_p5 = scmp.ne.s32.totalorder %s23_s9, %s528_s12  ;;  %p534_p7 = scmp.lt.s32.totalorder %s528_s12, %s528_s12 }
  0x14   :  { %p535_p8 = por %p534_p7, %p533_p6 }
  0x16   :  { %p536_p9 = pnand %p535_p8, %p529_p5 }
  0x18   :  { %539 = shalt.err (!%p536_p9)
}
  0x19   :  { %25 = dma.hbm_to_vmem [thread:$0]  %s730_s0, 128, %s23_s9, [#allocation3]  }
  0x1a   :  { %s548_s15 = scalar_lea.vmem %s46_s11, 2048  ;;  %p553_p11 = scmp.lt.s32.totalorder %s46_s11, %s46_s11 }
  0x1b   :  { %p549_p10 = scmp.ne.s32.totalorder %s46_s11, %s548_s15  ;;  %p554_p12 = scmp.lt.s32.totalorder %s548_s15, %s548_s15 }
  0x1d   :  { %p555_p13 = por %p554_p12, %p553_p11 }
  0x1f   :  { %p556_p0 = pnand %p555_p13, %p549_p10 }
  0x21   :  { %559 = shalt.err (!%p556_p0)
}
  0x22   :  { %51 = dma.hbm_to_vmem [thread:$0]  %s733_s3, 2048, %s46_s11, [#allocation6], %s609_s27, %s609_s27, %s610_s28  }
  0x23   :  { %s613_s17 = smov [#allocation8]  }
  0x24   :  { %s59_s18 = sshll.u32 %s613_s17, 4  ;;  %s60_s18 = int_to_ptr.vmem [resolvable:$true] %s59_s18 }
  0x25   :  { %s568_s19 = scalar_lea.vmem %s60_s18, 2048  ;;  %p573_p2 = scmp.lt.s32.totalorder %s60_s18, %s60_s18 }
  0x26   :  { %p569_p1 = scmp.ne.s32.totalorder %s60_s18, %s568_s19  ;;  %p574_p3 = scmp.lt.s32.totalorder %s568_s19, %s568_s19 }
  0x28   :  { %p575_p4 = por %p574_p3, %p573_p2 }
  0x2a   :  { %p576_p5 = pnand %p575_p4, %p569_p1 }
  0x2c   :  { %579 = shalt.err (!%p576_p5)
}
  0x2d   :  { %65 = dma.hbm_to_vmem [thread:$0]  %s735_s5, 2048, %s60_s18, [#allocation9], %s609_s27, %s609_s27, %s610_s28  }
  0x2e   :  { %600 = dma.done.wait [#allocation3], 128  }
  0x2f   :  { %601 = vsyncadd [#allocation3], 4294967168 }
  0x30   :  { %602 = dma.done.wait [#allocation6], 2304  }
  0x31   :  { %603 = vsyncadd [#allocation6], 4294964992 }
  0x32   :  { %604 = dma.done.wait [#allocation9], 2048  }
  0x33   :  { %605 = vsyncadd [#allocation9], 4294965248  ;;  %v614_v0 = vmov 0.0   ;;  %vm615_vm0 = vmmov 0   ;;  %v82_v1 = vld [vmem:[#allocation5 + $0x8] sm:$0xff]  ;;  %v81_v2 = vld [vmem:[#allocation5] sm:$0xff] }
  0x34   :  { %412 = vmatprep.subr.mxu0 %v614_v0  ;;  %416 = vmatprep.mubr.msk.f32.mxu0 %vm615_vm0, %v614_v0  ;;  %v80_v3 = vld [vmem:[#allocation2] sm:$0xff]  ;;  %vm90_vm1 = vcmask 130048   ;;  %v180_v4 = vld [vmem:[#allocation7 + $0x78] sm:$0xff]  ;;  %v179_v5 = vld [vmem:[#allocation7 + $0x70] sm:$0xff]  ;;  %s616_s24 = smov [#allocation10]  }
  0x35   :  { %419 = vmatprep.subr.mxu1 %v614_v0  ;;  %451 = vmatprep.mubr.msk.f32.mxu1 %vm615_vm0, %v614_v0  ;;  %v178_v6 = vld [vmem:[#allocation7 + $0x68] sm:$0xff]  ;;  %v177_v7 = vld [vmem:[#allocation7 + $0x60] sm:$0xff]  ;;  %v176_v8 = vld [vmem:[#allocation7 + $0x58] sm:$0xff]  ;;  %s360_s25 = sshll.u32 %s616_s24, 4  ;;  %s361_s25 = int_to_ptr.vmem [resolvable:$true] %s360_s25 }
  0x36   :  { %413 = vmatpush3.msra.mxu0 %v82_v1  ;;  %420 = vmatpush3.msra.mxu1 %v180_v4  ;;  %v175_v9 = vld [vmem:[#allocation7 + $0x50] sm:$0xff]  ;;  %v174_v10 = vld [vmem:[#allocation7 + $0x48] sm:$0xff]  ;;  %v173_v11 = vld [vmem:[#allocation7 + $0x40] sm:$0xff]  ;;  %s580_s26 = scalar_lea.vmem %s361_s25, 128  ;;  %p585_p7 = scmp.lt.s32.totalorder %s361_s25, %s361_s25 }
  0x37   :  { %414 = vmatprep.subr.mxu0 %v614_v0  ;;  %421 = vmatprep.subr.mxu1 %v614_v0  ;;  %v172_v12 = vld [vmem:[#allocation7 + $0x38] sm:$0xff]  ;;  %v171_v13 = vld [vmem:[#allocation7 + $0x30] sm:$0xff]  ;;  %v170_v14 = vld [vmem:[#allocation7 + $0x28] sm:$0xff]  ;;  %p581_p6 = scmp.ne.s32.totalorder %s361_s25, %s580_s26  ;;  %p586_p8 = scmp.lt.s32.totalorder %s580_s26, %s580_s26 }
  0x38   :  { %415 = vmatpush3.msra.mxu0 %v81_v2  ;;  %422 = vmatpush3.msra.mxu1 %v179_v5  ;;  %v169_v15 = vld [vmem:[#allocation7 + $0x20] sm:$0xff]  ;;  %v168_v16 = vld [vmem:[#allocation7 + $0x18] sm:$0xff]  ;;  %v167_v17 = vld [vmem:[#allocation7 + $0x10] sm:$0xff] }
  0x39   :  { %417 = vmatmul.mubr.msk.f32.vlgmr.msra.gmra.mxu0 %vm90_vm1, %v80_v3  ;;  %423 = vmatprep.subr.mxu1 %v614_v0  ;;  %v166_v18 = vld [vmem:[#allocation7 + $0x8] sm:$0xff]  ;;  %v165_v19 = vld [vmem:[#allocation7] sm:$0xff]  ;;  %v274_v20 = vld [vmem:[#allocation8 + $0x78] sm:$0xff]  ;;  %p587_p9 = por %p586_p8, %p585_p7 }
  0x3a   :  { %454 = vmatprep.subr.mxu0 %v614_v0  ;;  %424 = vmatpush3.msra.mxu1 %v178_v6  ;;  %v273_v21 = vld [vmem:[#allocation8 + $0x70] sm:$0xff]  ;;  %v272_v22 = vld [vmem:[#allocation8 + $0x68] sm:$0xff]  ;;  %v271_v23 = vld [vmem:[#allocation8 + $0x60] sm:$0xff] }
  0x3b   :  { %486 = vmatprep.mubr.msk.f32.mxu0 %vm615_vm0, %v614_v0  ;;  %425 = vmatprep.subr.mxu1 %v614_v0  ;;  %v270_v24 = vld [vmem:[#allocation8 + $0x58] sm:$0xff]  ;;  %v269_v25 = vld [vmem:[#allocation8 + $0x50] sm:$0xff]  ;;  %v268_v26 = vld [vmem:[#allocation8 + $0x48] sm:$0xff]  ;;  %p588_p10 = pnand %p587_p9, %p581_p6 }
  0x3c   :  { %426 = vmatpush3.msra.mxu1 %v177_v7  ;;  %455 = vmatpush3.msra.mxu0 %v274_v20  ;;  %v267_v27 = vld [vmem:[#allocation8 + $0x40] sm:$0xff]  ;;  %v266_v28 = vld [vmem:[#allocation8 + $0x38] sm:$0xff]  ;;  %v265_v29 = vld [vmem:[#allocation8 + $0x30] sm:$0xff] }
  0x3d   :  { %427 = vmatprep.subr.mxu1 %v614_v0  ;;  %456 = vmatprep.subr.mxu0 %v614_v0  ;;  %v264_v30 = vld [vmem:[#allocation8 + $0x28] sm:$0xff]  ;;  %v263_v31 = vld [vmem:[#allocation8 + $0x20] sm:$0xff]  ;;  %v262_v32 = vld [vmem:[#allocation8 + $0x18] sm:$0xff] }
  0x3e   :  { %428 = vmatpush3.msra.mxu1 %v176_v8  ;;  %457 = vmatpush3.msra.mxu0 %v273_v21  ;;  %v371_v33 = vld [vmem:[%s732_s2] ss:$0 sm:$0xff]  ;;  %v261_v38 = vld [vmem:[#allocation8 + $0x10] sm:$0xff]  ;;  %v259_v40 = vld [vmem:[#allocation8] sm:$0xff] }
  0x3f   :  { %429 = vmatprep.subr.mxu1 %v614_v0  ;;  %458 = vmatprep.subr.mxu0 %v614_v0  ;;  %v260_v39 = vld [vmem:[#allocation8 + $0x8] sm:$0xff] }
  0x40   :  { %430 = vmatpush3.msra.mxu1 %v175_v9  ;;  %459 = vmatpush3.msra.mxu0 %v272_v22  ;;  %v373_v41 = vld [vmem:[%s734_s4] ss:$0 sm:$0xff] }
  0x41   :  { %431 = vmatprep.subr.mxu1 %v614_v0  ;;  %460 = vmatprep.subr.mxu0 %v614_v0  ;;  %v374_v46 = vld [vmem:[%s736_s6] ss:$0 sm:$0xff] }
  0x42   :  { %432 = vmatpush3.msra.mxu1 %v174_v10  ;;  %461 = vmatpush3.msra.mxu0 %v271_v23 }
  0x43   :  { %433 = vmatprep.subr.mxu1 %v614_v0  ;;  %462 = vmatprep.subr.mxu0 %v614_v0 }
  0x44   :  { %434 = vmatpush3.msra.mxu1 %v173_v11  ;;  %463 = vmatpush3.msra.mxu0 %v270_v24 }
  0x45   :  { %435 = vmatprep.subr.mxu1 %v614_v0  ;;  %464 = vmatprep.subr.mxu0 %v614_v0 }
  0x46   :  { %436 = vmatpush3.msra.mxu1 %v172_v12  ;;  %465 = vmatpush3.msra.mxu0 %v269_v25 }
  0x47   :  { %437 = vmatprep.subr.mxu1 %v614_v0  ;;  %466 = vmatprep.subr.mxu0 %v614_v0 }
  0x48   :  { %438 = vmatpush3.msra.mxu1 %v171_v13  ;;  %467 = vmatpush3.msra.mxu0 %v268_v26 }
  0x49   :  { %439 = vmatprep.subr.mxu1 %v614_v0  ;;  %468 = vmatprep.subr.mxu0 %v614_v0 }
  0x4a   :  { %440 = vmatpush3.msra.mxu1 %v170_v14  ;;  %469 = vmatpush3.msra.mxu0 %v267_v27 }
  0x4b   :  { %441 = vmatprep.subr.mxu1 %v614_v0  ;;  %470 = vmatprep.subr.mxu0 %v614_v0 }
  0x4c   :  { %442 = vmatpush3.msra.mxu1 %v169_v15  ;;  %471 = vmatpush3.msra.mxu0 %v266_v28 }
  0x4d   :  { %443 = vmatprep.subr.mxu1 %v614_v0  ;;  %472 = vmatprep.subr.mxu0 %v614_v0 }
  0x4e   :  { %444 = vmatpush3.msra.mxu1 %v168_v16  ;;  %473 = vmatpush3.msra.mxu0 %v265_v29 }
  0x4f   :  { %445 = vmatprep.subr.mxu1 %v614_v0  ;;  %474 = vmatprep.subr.mxu0 %v614_v0 }
  0x50   :  { %446 = vmatpush3.msra.mxu1 %v167_v17  ;;  %475 = vmatpush3.msra.mxu0 %v264_v30 }
  0x51   :  { %447 = vmatprep.subr.mxu1 %v614_v0  ;;  %476 = vmatprep.subr.mxu0 %v614_v0 }
  0x52   :  { %448 = vmatpush3.msra.mxu1 %v166_v18  ;;  %477 = vmatpush3.msra.mxu0 %v263_v31 }
  0x53   :  { %449 = vmatprep.subr.mxu1 %v614_v0  ;;  %478 = vmatprep.subr.mxu0 %v614_v0 }
  0x54   :  { %450 = vmatpush3.msra.mxu1 %v165_v19  ;;  %479 = vmatpush3.msra.mxu0 %v262_v32 }
  0x55   :  { %480 = vmatprep.subr.mxu0 %v614_v0 }
  0x56   :  { %481 = vmatpush3.msra.mxu0 %v261_v38 }
  0x57   :  { %482 = vmatprep.subr.mxu0 %v614_v0 }
  0x58   :  { %483 = vmatpush3.msra.mxu0 %v260_v39 }
  0x59   :  { %484 = vmatprep.subr.mxu0 %v614_v0 }
  0x5a   :  { %485 = vmatpush3.msra.mxu0 %v259_v40 }
  0xf9   :  { %v160_v34 = vpop.f32.mrf.mxu0 }
  0xfa   :  { %v161_v35 = vadd.f32 %v371_v33, %v160_v34 }
  0xfb   :  { %v418_v36 = vpop.f32.mrf.mxu0 }
  0xfc   :  { %v164_v37 = vmax.f32 %v161_v35, 0.0 }
  0xfe   :  { %452 = vmatmul.mubr.f32.vlgmr.msra.gmra.mxu1 %v164_v37 }
 0x1be   :  { %v254_v42 = vpop.f32.mrf.mxu1 }
 0x1bf   :  { %v255_v43 = vadd.f32 %v373_v41, %v254_v42 }
 0x1c0   :  { %v453_v44 = vpop.f32.mrf.mxu1 }
 0x1c1   :  { %v258_v45 = vmax.f32 %v255_v43, 0.0 }
 0x1c3   :  { %487 = vmatmul.mubr.f32.vlgmr.msra.gmra.mxu0 %v258_v45 }
 0x283   :  { %v348_v47 = vpop.f32.mrf.mxu0 }
 0x284   :  { %v349_v48 = vadd.f32 %v374_v46, %v348_v47 }
 0x285   :  { %v488_v49 = vpop.f32.mrf.mxu0 }
 0x286   :  { %498 = vtanh.f32 %v349_v48 }
 0x293   :  { %v499_v50 = vpop.eup %498 }
 0x294   :  { %353 = vst [vmem:[#allocation10] sm:$0xff] %v499_v50 }
 0x295   :  { %591 = shalt.err (!%p588_p10)
}
 0x296   :  { %363 = dma.vmem_to_hbm [thread:$0]  %s361_s25, 128, %s737_s7, [#allocation4]  }
 0x297   :  { %606 = dma.done.wait [#allocation4], 128  }
 0x298   :  { %607 = vsyncadd [#allocation4], 4294967168 }
 0x299   :  { %367 = vsyncpa [#allocation3], 1 }
 0x29a   :  { %368 = vsyncpa [#allocation6], 1 }
 0x29b   :  { %369 = vsyncpa [#allocation9], 1 }
 0x29c   :  { %370 = vsyncpa [#allocation4], 1 }

</bundles_post_ra>
